<compile_context>
chip_gen: v7x
topology: tpu7x:2x2x1
jax: 0.10.0
libtpu: 0.0.40
codegen_flags: <defaults>
</compile_context>

<pallas_src>
import functools

import jax
import jax.numpy as jnp
from jax import lax
from jax.experimental import pallas as pl
from jax.experimental.pallas import tpu as pltpu


# ----------------------------------------------------------------------------
# helpers: tiling / padding
# ----------------------------------------------------------------------------
def _round_up(x, m):
    return ((x + m - 1) // m) * m


def _fit_tile(dim, preferred=256, align=128):
    """Pick a lane/sublane-aligned tile: `preferred` for big dims, else the
    whole (128-aligned) padded dim."""
    if dim >= preferred:
        return preferred
    return _round_up(dim, align)


def _pad2d(x, rows, cols):
    r, c = x.shape
    return jnp.pad(x, ((0, rows - r), (0, cols - c)))


# ----------------------------------------------------------------------------
# Kernel 1: tiled propagation matmul  o = (A^T if transpose_a else A) @ X
# ----------------------------------------------------------------------------
def _mm_kernel(a_ref, x_ref, o_ref, acc_ref, *, transpose_a):
    @pl.when(pl.program_id(2) == 0)
    def _():
        acc_ref[...] = jnp.zeros_like(acc_ref)

    a = a_ref[...]
    x = x_ref[...]
    if transpose_a:
        # A block is A[k_tile, i_tile]; contract A's dim 0 with X's dim 0 so
        # the transpose is handled on-chip (no A^T materialized in HBM).
        acc_ref[...] += lax.dot_general(
            a, x, dimension_numbers=(((0,), (0,)), ((), ())),
            preferred_element_type=jnp.float32)
    else:
        acc_ref[...] += jnp.dot(a, x, preferred_element_type=jnp.float32)

    @pl.when(pl.program_id(2) == pl.num_programs(2) - 1)
    def _():
        o_ref[...] = acc_ref[...].astype(o_ref.dtype)


def pallas_matmul(a, x, *, transpose_a=False, tm=256, tk=256, tf=256,
                  out_dtype=None):
    """Tiled MXU matmul.  a: [M,K] (or [K,M] if transpose_a), x: [K,F].
    All dims must already be padded to multiples of the tiles."""
    if transpose_a:
        K, M = a.shape
    else:
        M, K = a.shape
    K2, F = x.shape
    assert K == K2
    assert M % tm == 0 and K % tk == 0 and F % tf == 0
    out_dtype = out_dtype or x.dtype

    if transpose_a:
        a_spec = pl.BlockSpec((tk, tm), lambda i, j, k: (k, i))
    else:
        a_spec = pl.BlockSpec((tm, tk), lambda i, j, k: (i, k))

    return pl.pallas_call(
        functools.partial(_mm_kernel, transpose_a=transpose_a),
        out_shape=jax.ShapeDtypeStruct((M, F), out_dtype),
        grid_spec=pltpu.PrefetchScalarGridSpec(
            num_scalar_prefetch=0,
            grid=(M // tm, F // tf, K // tk),
            in_specs=[
                a_spec,
                pl.BlockSpec((tk, tf), lambda i, j, k: (k, j)),
            ],
            out_specs=pl.BlockSpec((tm, tf), lambda i, j, k: (i, j)),
            scratch_shapes=[pltpu.VMEM((tm, tf), jnp.float32)],
        ),
        compiler_params=pltpu.CompilerParams(
            dimension_semantics=("parallel", "parallel", "arbitrary"),
            vmem_limit_bytes=48 * 1024 * 1024,
        ),
    )(a, x)


# ----------------------------------------------------------------------------
# Kernel 2: fused head.
#   out[i_tile] = sum_t feats[t, i_tile] @ W_scaled[g_of_t[t]]
# The hop-mean (1/K) is folded into W_scaled, so "mean over hops + concat of
# 7 groups + Linear" collapses to one accumulating matmul stream.
# Grid: (node tiles [parallel / megacore], terms [arbitrary reduction]).
# ----------------------------------------------------------------------------
def _head_kernel(g_of_t_ref, f_ref, w_ref, o_ref, acc_ref):
    del g_of_t_ref  # only used by the index_maps (scalar prefetch)
    t = pl.program_id(1)

    @pl.when(t == 0)
    def _():
        acc_ref[...] = jnp.zeros_like(acc_ref)

    acc_ref[...] += jnp.dot(
        f_ref[...], w_ref[...], preferred_element_type=jnp.float32)

    @pl.when(t == pl.num_programs(1) - 1)
    def _():
        o_ref[...] = acc_ref[...].astype(o_ref.dtype)


def pallas_head(g_of_t, feats, w, *, tn):
    """feats: [T, N_pad, F_pad], w: [G, F_pad, C_pad] (C_pad lane-dense),
    g_of_t: int32 [T] term -> group map (scalar-prefetched)."""
    T, N_pad, F_pad = feats.shape
    _, F2, C_pad = w.shape
    assert F2 == F_pad and N_pad % tn == 0 and C_pad % 128 == 0

    return pl.pallas_call(
        _head_kernel,
        out_shape=jax.ShapeDtypeStruct((N_pad, C_pad), jnp.float32),
        grid_spec=pltpu.PrefetchScalarGridSpec(
            num_scalar_prefetch=1,
            grid=(N_pad // tn, T),
            in_specs=[
                pl.BlockSpec((pl.Squeezed(), tn, F_pad),
                             lambda i, t, g: (t, i, 0)),
                pl.BlockSpec((pl.Squeezed(), F_pad, C_pad),
                             lambda i, t, g: (g[t], 0, 0)),
            ],
            out_specs=pl.BlockSpec((tn, C_pad), lambda i, t, g: (i, 0)),
            scratch_shapes=[pltpu.VMEM((tn, C_pad), jnp.float32)],
        ),
        compiler_params=pltpu.CompilerParams(
            dimension_semantics=("parallel", "arbitrary"),
            vmem_limit_bytes=48 * 1024 * 1024,
        ),
    )(g_of_t, feats, w)


# ----------------------------------------------------------------------------
# ADPABaseModel in JAX (preprocess + forward), hot paths in Pallas.
# ----------------------------------------------------------------------------
class ADPABaseModelPallas:
    """Deterministic instantiation of ADPABaseModel's forward semantics."""

    # Operator composition per direction group; each entry is the per-hop
    # sequence of applications (True -> apply A^T), applied left-to-right.
    #   A, A^T, AA, A A^T, A^T A, A^T A^T
    GROUP_OPS = (
        (False,),
        (True,),
        (False, False),
        (True, False),   # hop = A @ (A^T @ cur)
        (False, True),   # hop = A^T @ (A @ cur)
        (True, True),
    )

    def __init__(self, feat_dim, num_classes, prop_steps, key,
                 compute_dtype=jnp.float32):
        self.K = prop_steps
        self.C = num_classes
        self.F = feat_dim
        self.compute_dtype = compute_dtype
        kw, kb = jax.random.split(key)
        # base_model: Linear(7*F -> C), stored as per-group slices [7, F, C]
        scale = 1.0 / jnp.sqrt(7.0 * feat_dim)
        self.W = jax.random.uniform(
            kw, (7, feat_dim, num_classes), jnp.float32, -scale, scale)
        self.b = jax.random.uniform(
            kb, (1, num_classes), jnp.float32, -scale, scale)
        self.feats_flat = None

    def preprocess(self, adj, feature):
        N, F = feature.shape
        assert adj.shape == (N, N) and F == self.F
        self.N = N
        cd = self.compute_dtype

        # Tile / padding plan (lane & sublane aligned; output lane-dense).
        self.tn = _fit_tile(N)                 # node tile (rows + contraction)
        self.tf = _fit_tile(F)                 # feature tile
        self.N_pad = _round_up(N, self.tn)
        self.F_pad = _round_up(F, self.tf)
        self.C_pad = _round_up(self.C, 128)    # lane-dense head output

        adj_p = _pad2d(adj.astype(cd), self.N_pad, self.N_pad)
        x_p = _pad2d(feature.astype(cd), self.N_pad, self.F_pad)

        mm = functools.partial(pallas_matmul, tm=self.tn, tk=self.tn,
                               tf=self.tf)

        # naive_graph_op.propagate: composed operator applications only —
        # never form AA / AA^T / A^TA / A^TA^T (N x N) densely, never
        # materialize adj.T.  (When N_pad*F_pad fits VMEM the K-hop chain
        # could further be fused into one pallas_call with `cur` on-chip.)
        terms = [x_p]                          # group 0: original features (one copy)
        for ops in self.GROUP_OPS:
            cur = x_p
            for _ in range(self.K):
                for t_a in ops:
                    cur = mm(adj_p, cur, transpose_a=t_a)
                terms.append(cur)
        self.feats_flat = jnp.stack(terms, axis=0)        # [T, N_pad, F_pad]

        # term -> group map for the scalar-prefetch index_map.
        g_of_t = [0] + [g for g in range(1, 7) for _ in range(self.K)]
        self.g_of_t = jnp.asarray(g_of_t, dtype=jnp.int32)

        # Head weights padded to [7, F_pad, C_pad]; fold the hop-mean (1/K)
        # into groups 1..6 so the head kernel is a pure accumulating stream.
        w_pad = jnp.zeros((7, self.F_pad, self.C_pad), jnp.float32)
        w_pad = w_pad.at[:, :F, :self.C].set(self.W)
        w_pad = w_pad.at[1:].multiply(1.0 / self.K)
        self.W_head = w_pad.astype(cd)

    def forward(self, idx):
        # pre_msg_op.aggregate (mean over hops) + base_model (concat + Linear)
        # fused into a single Pallas kernel with lane-dense (padded-C) output.
        logits_pad = pallas_head(self.g_of_t, self.feats_flat, self.W_head,
                                 tn=self.tn)                # [N_pad, C_pad] f32
        # bias add + output[idx] gather: cheap glue in plain JAX.
        return logits_pad[idx, :self.C] + self.b


if __name__ == "__main__":
    key = jax.random.PRNGKey(0)
    k_adj, k_feat, k_model = jax.random.split(key, 3)

    N, F, C, K = 16, 32, 8, 2          # nodes, feat dim, classes, prop steps
    adj = jax.random.uniform(k_adj, (N, N), jnp.float32)
    adj = adj / jnp.sum(adj, axis=1, keepdims=True)   # crude row normalization
    feature = jax.random.normal(k_feat, (N, F), jnp.float32)
    idx = jnp.array([0, 3, 5, 7, 11], dtype=jnp.int32)

    # f32 model (tight numerical check)
    model = ADPABaseModelPallas(F, C, K, k_model)
    model.preprocess(adj, feature)
    out = jax.block_until_ready(model.forward(idx))

    # Pure-JAX reference of the same forward semantics.
    A, AT = adj, adj.T

    def agg(seq):
        outs, cur = [], feature
        for _ in range(K):
            for m in seq:
                cur = m @ cur
            outs.append(cur)
        return jnp.mean(jnp.stack(outs, 0), axis=0)

    groups = [feature, agg([A]), agg([AT]), agg([A, A]), agg([AT, A]),
              agg([A, AT]), agg([AT, AT])]
    ref = jnp.einsum("gnf,gfc->nc", jnp.stack(groups, 0), model.W) + model.b
    ref = ref[idx]

    assert out.shape == (idx.shape[0], C)
    assert jnp.allclose(out, ref, atol=1e-3, rtol=1e-3), \
        float(jnp.max(jnp.abs(out - ref)))

    # bf16-operand variant (MXU bf16 inputs, f32 accumulation) — loose check.
    model_bf16 = ADPABaseModelPallas(F, C, K, k_model,
                                     compute_dtype=jnp.bfloat16)
    model_bf16.preprocess(adj, feature)
    out_bf16 = jax.block_until_ready(model_bf16.forward(idx))
    assert out_bf16.shape == (idx.shape[0], C)
    assert bool(jnp.all(jnp.isfinite(out_bf16)))
    assert jnp.allclose(out_bf16, ref, atol=3e-1, rtol=1e-1)

    print("KERNEL_OK")
</pallas_src>

<mosaic_0001>
module attributes {stable_mosaic.version = 11 : i64} {
  func.func @_mm_kernel(%arg0: i32, %arg1: i32, %arg2: i32, %arg3: memref<128x128xf32, #tpu.memory_space<vmem>>, %arg4: memref<128x128xf32, #tpu.memory_space<vmem>>, %arg5: memref<128x128xf32, #tpu.memory_space<vmem>>, %arg6: memref<128x128xf32, #tpu.memory_space<vmem>>) attributes {dimension_semantics = [#tpu.dimension_semantics<parallel>, #tpu.dimension_semantics<parallel>, #tpu.dimension_semantics<arbitrary>], iteration_bounds = array<i64: 1, 1, 1>, scalar_prefetch = 0 : i64, scratch_operands = 1 : i64, tpu.core_type = #tpu.core_type<tc>, window_params = [{transform_indices = @transform_0, window_bounds = array<i64: 128, 128>}, {transform_indices = @transform_1, window_bounds = array<i64: 128, 128>}, {transform_indices = @transform_2, window_bounds = array<i64: 128, 128>}]} {
    %c0_i32 = arith.constant 0 : i32
    %0 = arith.cmpi eq, %arg2, %c0_i32 : i32
    %1 = arith.extui %0 : i1 to i32
    %c0_i32_0 = arith.constant 0 : i32
    %2 = arith.cmpi ne, %1, %c0_i32_0 : i32
    scf.if %2 {
      %cst_10 = arith.constant 0.000000e+00 : f32
      %12 = vector.broadcast %cst_10 : f32 to vector<128x128xf32>
      %c0_11 = arith.constant 0 : index
      %c0_12 = arith.constant 0 : index
      %13 = vector.load %arg6[%c0_11, %c0_12] : memref<128x128xf32, #tpu.memory_space<vmem>>, vector<128x128xf32>
      tpu.vector_store %arg6[%c0_11, %c0_12], %12 {strides = array<i32>} : memref<128x128xf32, #tpu.memory_space<vmem>>, vector<128x128xf32>,
    } else {
    }
    %c0 = arith.constant 0 : index
    %c0_1 = arith.constant 0 : index
    %3 = vector.load %arg3[%c0, %c0_1] : memref<128x128xf32, #tpu.memory_space<vmem>>, vector<128x128xf32>
    %c0_2 = arith.constant 0 : index
    %c0_3 = arith.constant 0 : index
    %4 = vector.load %arg4[%c0_2, %c0_3] : memref<128x128xf32, #tpu.memory_space<vmem>>, vector<128x128xf32>
    %c0_4 = arith.constant 0 : index
    %c0_5 = arith.constant 0 : index
    %5 = vector.load %arg6[%c0_4, %c0_5] : memref<128x128xf32, #tpu.memory_space<vmem>>, vector<128x128xf32>
    %cst = arith.constant dense<0.000000e+00> : vector<128x128xf32>
    %6 = tpu.matmul %3, %4, %cst {dimension_numbers = #tpu.dot_dimension_numbers<[1], [0], [0], [1], [0, 0, 1, 1], [], []>} : vector<128x128xf32>, vector<128x128xf32>, vector<128x128xf32> -> vector<128x128xf32>
    %7 = arith.addf %5, %6 : vector<128x128xf32>
    %c0_6 = arith.constant 0 : index
    %c0_7 = arith.constant 0 : index
    %8 = vector.load %arg6[%c0_6, %c0_7] : memref<128x128xf32, #tpu.memory_space<vmem>>, vector<128x128xf32>
    tpu.vector_store %arg6[%c0_6, %c0_7], %7 {strides = array<i32>} : memref<128x128xf32, #tpu.memory_space<vmem>>, vector<128x128xf32>,
    %c0_i32_8 = arith.constant 0 : i32
    %9 = arith.cmpi eq, %arg2, %c0_i32_8 : i32
    %10 = arith.extui %9 : i1 to i32
    %c0_i32_9 = arith.constant 0 : i32
    %11 = arith.cmpi ne, %10, %c0_i32_9 : i32
    scf.if %11 {
      %c0_10 = arith.constant 0 : index
      %c0_11 = arith.constant 0 : index
      %12 = vector.load %arg6[%c0_10, %c0_11] : memref<128x128xf32, #tpu.memory_space<vmem>>, vector<128x128xf32>
      %c0_12 = arith.constant 0 : index
      %c0_13 = arith.constant 0 : index
      %13 = vector.load %arg5[%c0_12, %c0_13] : memref<128x128xf32, #tpu.memory_space<vmem>>, vector<128x128xf32>
      tpu.vector_store %arg5[%c0_12, %c0_13], %12 {strides = array<i32>} : memref<128x128xf32, #tpu.memory_space<vmem>>, vector<128x128xf32>,
    } else {
    }
    return
  }
  func.func @transform_0(%arg0: i32, %arg1: i32, %arg2: i32) -> (i32, i32) {
    %c0_i32 = arith.constant 0 : i32
    return %arg0, %arg2 : i32, i32
  }
  func.func @transform_1(%arg0: i32, %arg1: i32, %arg2: i32) -> (i32, i32) {
    %c0_i32 = arith.constant 0 : i32
    return %arg2, %arg1 : i32, i32
  }
  func.func @transform_2(%arg0: i32, %arg1: i32, %arg2: i32) -> (i32, i32) {
    %c0_i32 = arith.constant 0 : i32
    return %arg0, %arg1 : i32, i32
  }
}

</mosaic_0001>

<bundles_post_ra>
// kernel: tpu_custom_call.1
= control target key start
LH: loop header
LB: loop body
LE: loop exit
PB: predicated region body
PF: predicated region fallthrough
CT: control target
= control target key end

     0   :  { %7 = vsyncpa [#allocation4], 0  ;;  %s616_s0 = inlined_call_operand.hbm [shape: f32[128,128], index: 0, kind: input, shape index: {}]   ;;  %s617_s1 = inlined_call_operand.hbm [shape: f32[128,128], index: 1, kind: input, shape index: {}]   ;;  %s618_s2 = inlined_call_operand.hbm [shape: f32[128,128], index: 2, kind: output, shape index: {}]  }
   0x1   :  { %8 = vsyncpa [#allocation7], 0 }
   0x2   :  { %9 = vsyncpa [#allocation5], 0  ;;  %s551_s9 = smov [#allocation3]   ;;  %s479_s13 = scalar_lea.hbm %s616_s0, 2048 }
   0x3   :  { %s15_s10 = sshll.u32 %s551_s9, 4  ;;  %p480_p0 = scmp.ne.s32.totalorder %s616_s0, %s479_s13  ;;  %s16_s10 = int_to_ptr.vmem [resolvable:$true] %s15_s10 }
   0x4   :  { %p483_p1 = scmp.lt.u32.totalorder %s479_s13, %s616_s0 }
   0x6   :  { %p485_p2 = pnand %p483_p1, %p480_p0 }
   0x8   :  { %488 = shalt.err (!%p485_p2)
}
   0x9   :  { %s489_s18 = scalar_lea.vmem %s16_s10, 2048  ;;  %p494_p4 = scmp.lt.s32.totalorder %s16_s10, %s16_s10 }
   0xa   :  { %p490_p3 = scmp.ne.s32.totalorder %s16_s10, %s489_s18  ;;  %p495_p5 = scmp.lt.s32.totalorder %s489_s18, %s489_s18 }
   0xc   :  { %p496_p6 = por %p495_p5, %p494_p4 }
   0xe   :  { %p497_p7 = pnand %p496_p6, %p490_p3 }
  0x10   :  { %500 = shalt.err (!%p497_p7)
}
  0x11   :  { %s552_s19 = smov 128   ;;  %s553_s20 = smov 8  }
  0x12   :  { %21 = dma.hbm_to_vmem [thread:$0]  %s616_s0, 2048, %s16_s10, [#allocation4], %s552_s19, %s552_s19, %s553_s20  }
  0x13   :  { %s554_s23 = smov [#allocation6]   ;;  %s501_s27 = scalar_lea.hbm %s617_s1, 2048 }
  0x14   :  { %s27_s24 = sshll.u32 %s554_s23, 4  ;;  %p502_p8 = scmp.ne.s32.totalorder %s617_s1, %s501_s27  ;;  %s28_s24 = int_to_ptr.vmem [resolvable:$true] %s27_s24 }
  0x15   :  { %p505_p9 = scmp.lt.u32.totalorder %s501_s27, %s617_s1 }
  0x17   :  { %p507_p10 = pnand %p505_p9, %p502_p8 }
  0x19   :  { %510 = shalt.err (!%p507_p10)
}
  0x1a   :  { %s511_s4 = scalar_lea.vmem %s28_s24, 2048  ;;  %p516_p12 = scmp.lt.s32.totalorder %s28_s24, %s28_s24 }
  0x1b   :  { %p512_p11 = scmp.ne.s32.totalorder %s28_s24, %s511_s4  ;;  %p517_p13 = scmp.lt.s32.totalorder %s511_s4, %s511_s4 }
  0x1d   :  { %p518_p0 = por %p517_p13, %p516_p12 }
  0x1f   :  { %p519_p1 = pnand %p518_p0, %p512_p11 }
  0x21   :  { %522 = shalt.err (!%p519_p1)
}
  0x22   :  { %33 = dma.hbm_to_vmem [thread:$0]  %s617_s1, 2048, %s28_s24, [#allocation7], %s552_s19, %s552_s19, %s553_s20  }
  0x23   :  { %545 = dma.done.wait [#allocation4], 2048  }
  0x24   :  { %546 = vsyncadd [#allocation4], 4294965248 }
  0x25   :  { %547 = dma.done.wait [#allocation7], 2048  }
  0x26   :  { %548 = vsyncadd [#allocation7], 4294965248  ;;  %v76_v0 = vld [vmem:[#allocation6] sm:$0xff]  ;;  %v77_v1 = vld [vmem:[#allocation6 + $0x8] sm:$0xff]  ;;  %s555_s1 = smov [#allocation8]  }
  0x27   :  { %v78_v2 = vld [vmem:[#allocation6 + $0x10] sm:$0xff]  ;;  %v426_v3 = vpack.c.bf16 %v77_v1, %v76_v0  ;;  %v79_v4 = vld [vmem:[#allocation6 + $0x18] sm:$0xff]  ;;  %v80_v6 = vld [vmem:[#allocation6 + $0x20] sm:$0xff]  ;;  %s325_s6 = sshll.u32 %s555_s1, 4  ;;  %s326_s6 = int_to_ptr.vmem [resolvable:$true] %s325_s6 }
  0x28   :  { %v430_v5 = vpack.c.bf16 %v79_v4, %v78_v2  ;;  %v81_v7 = vld [vmem:[#allocation6 + $0x28] sm:$0xff]  ;;  %v60_v9 = vld [vmem:[#allocation3] sm:$0xff]  ;;  %v82_v11 = vld [vmem:[#allocation6 + $0x30] sm:$0xff]  ;;  %s523_s7 = scalar_lea.vmem %s326_s6, 2048  ;;  %p528_p3 = scmp.lt.s32.totalorder %s326_s6, %s326_s6 }
  0x29   :  { %427 = vmatprep.subr.bf16.mxu0 %v426_v3  ;;  %458 = vmatprep.subr.bf16.mxu1 %v426_v3  ;;  %v434_v8 = vpack.c.bf16 %v81_v7, %v80_v6  ;;  %v68_v10 = vld [vmem:[#allocation3 + $0x40] sm:$0xff]  ;;  %v83_v12 = vld [vmem:[#allocation6 + $0x38] sm:$0xff]  ;;  %v85_v15 = vld [vmem:[#allocation6 + $0x48] sm:$0xff]  ;;  %p524_p2 = scmp.ne.s32.totalorder %s326_s6, %s523_s7  ;;  %p529_p4 = scmp.lt.s32.totalorder %s523_s7, %s523_s7 }
  0x2a   :  { %429 = vmatpush3.bf16.msra.mxu0 %v426_v3  ;;  %466 = vmatpush3.bf16.msra.mxu1 %v426_v3  ;;  %v438_v13 = vpack.c.bf16 %v83_v12, %v82_v11  ;;  %v84_v14 = vld [vmem:[#allocation6 + $0x40] sm:$0xff]  ;;  %v86_v17 = vld [vmem:[#allocation6 + $0x50] sm:$0xff]  ;;  %v87_v18 = vld [vmem:[#allocation6 + $0x58] sm:$0xff] }
  0x2b   :  { %431 = vmatprep.subr.bf16.mxu0 %v430_v5  ;;  %459 = vmatprep.subr.bf16.mxu1 %v430_v5  ;;  %v442_v16 = vpack.c.bf16 %v85_v15, %v84_v14  ;;  %v446_v19 = vpack.c.bf16 %v87_v18, %v86_v17  ;;  %v88_v20 = vld [vmem:[#allocation6 + $0x60] sm:$0xff]  ;;  %v89_v21 = vld [vmem:[#allocation6 + $0x68] sm:$0xff]  ;;  %v90_v23 = vld [vmem:[#allocation6 + $0x70] sm:$0xff]  ;;  %p530_p5 = por %p529_p4, %p528_p3 }
  0x2c   :  { %402 = vmatprep.mubr.f32.mxu0 %v60_v9  ;;  %414 = vmatprep.mubr.f32.mxu1 %v68_v10  ;;  %v450_v22 = vpack.c.bf16 %v89_v21, %v88_v20  ;;  %v91_v24 = vld [vmem:[#allocation6 + $0x78] sm:$0xff]  ;;  %v61_v26 = vld [vmem:[#allocation3 + $0x8] sm:$0xff]  ;;  %v62_v28 = vld [vmem:[#allocation3 + $0x10] sm:$0xff] }
  0x2d   :  { %v454_v25 = vpack.c.bf16 %v91_v24, %v90_v23  ;;  %v69_v27 = vld [vmem:[#allocation3 + $0x48] sm:$0xff]  ;;  %v70_v29 = vld [vmem:[#allocation3 + $0x50] sm:$0xff]  ;;  %v63_v30 = vld [vmem:[#allocation3 + $0x18] sm:$0xff]  ;;  %p531_p6 = pnand %p530_p5, %p524_p2 }
  0x2e   :  { %433 = vmatpush3.bf16.msra.mxu0 %v430_v5  ;;  %467 = vmatpush3.bf16.msra.mxu1 %v430_v5  ;;  %v71_v31 = vld [vmem:[#allocation3 + $0x58] sm:$0xff]  ;;  %v64_v32 = vld [vmem:[#allocation3 + $0x20] sm:$0xff]  ;;  %v65_v34 = vld [vmem:[#allocation3 + $0x28] sm:$0xff] }
  0x2f   :  { %435 = vmatprep.subr.bf16.mxu0 %v434_v8  ;;  %460 = vmatprep.subr.bf16.mxu1 %v434_v8  ;;  %v72_v33 = vld [vmem:[#allocation3 + $0x60] sm:$0xff]  ;;  %v73_v35 = vld [vmem:[#allocation3 + $0x68] sm:$0xff]  ;;  %v66_v36 = vld [vmem:[#allocation3 + $0x30] sm:$0xff] }
  0x30   :  { %v74_v37 = vld [vmem:[#allocation3 + $0x70] sm:$0xff]  ;;  %v67_v38 = vld [vmem:[#allocation3 + $0x38] sm:$0xff] }
  0x31   :  { %v75_v39 = vld [vmem:[#allocation3 + $0x78] sm:$0xff] }
  0x32   :  { %437 = vmatpush3.bf16.msra.mxu0 %v434_v8  ;;  %468 = vmatpush3.bf16.msra.mxu1 %v434_v8 }
  0x33   :  { %439 = vmatprep.subr.bf16.mxu0 %v438_v13  ;;  %461 = vmatprep.subr.bf16.mxu1 %v438_v13 }
  0x36   :  { %441 = vmatpush3.bf16.msra.mxu0 %v438_v13  ;;  %469 = vmatpush3.bf16.msra.mxu1 %v438_v13 }
  0x37   :  { %443 = vmatprep.subr.bf16.mxu0 %v442_v16  ;;  %462 = vmatprep.subr.bf16.mxu1 %v442_v16 }
  0x3a   :  { %445 = vmatpush3.bf16.msra.mxu0 %v442_v16  ;;  %470 = vmatpush3.bf16.msra.mxu1 %v442_v16 }
  0x3b   :  { %447 = vmatprep.subr.bf16.mxu0 %v446_v19  ;;  %463 = vmatprep.subr.bf16.mxu1 %v446_v19 }
  0x3e   :  { %449 = vmatpush3.bf16.msra.mxu0 %v446_v19  ;;  %471 = vmatpush3.bf16.msra.mxu1 %v446_v19 }
  0x3f   :  { %451 = vmatprep.subr.bf16.mxu0 %v450_v22  ;;  %464 = vmatprep.subr.bf16.mxu1 %v450_v22 }
  0x42   :  { %453 = vmatpush3.bf16.msra.mxu0 %v450_v22  ;;  %472 = vmatpush3.bf16.msra.mxu1 %v450_v22 }
  0x43   :  { %455 = vmatprep.subr.bf16.mxu0 %v454_v25  ;;  %465 = vmatprep.subr.bf16.mxu1 %v454_v25 }
  0x46   :  { %457 = vmatpush3.bf16.msra.mxu0 %v454_v25  ;;  %473 = vmatpush3.bf16.msra.mxu1 %v454_v25 }
  0x49   :  { %403 = vmatmul.mubr.f32.vlgmr.msra.gmra.mrb[0].mxu0 %v61_v26  ;;  %415 = vmatmul.mubr.f32.vlgmr.msra.gmra.mrb[0].mxu1 %v69_v27 }
  0x4a   :  { %405 = vmatprep.mubr.f32.mxu0 %v62_v28  ;;  %417 = vmatprep.mubr.f32.mxu1 %v70_v29 }
  0x4d   :  { %406 = vmatmul.mubr.f32.gmra.mrb[2].mxu0 %v63_v30  ;;  %418 = vmatmul.mubr.f32.gmra.mrb[2].mxu1 %v71_v31 }
  0x4e   :  { %408 = vmatprep.mubr.f32.mxu0 %v64_v32  ;;  %420 = vmatprep.mubr.f32.mxu1 %v72_v33 }
  0x51   :  { %409 = vmatmul.mubr.f32.gmra.mrb[4].mxu0 %v65_v34  ;;  %421 = vmatmul.mubr.f32.gmra.mrb[4].mxu1 %v73_v35 }
  0x52   :  { %411 = vmatprep.mubr.f32.mxu0 %v66_v36  ;;  %423 = vmatprep.mubr.f32.mxu1 %v74_v37 }
  0x55   :  { %412 = vmatmul.mubr.f32.gmra.mrb[6].mxu0 %v67_v38  ;;  %424 = vmatmul.mubr.f32.gmra.mrb[6].mxu1 %v75_v39 }
 0x11c   :  { %v404_v40 = vpop.f32.mrb[0].mxu0  ;;  %v416_v41 = vpop.f32.mrb[0].mxu1 }
 0x11d   :  { %305 = vst [vmem:[#allocation8 + $0x8] sm:$0xff] %v404_v40  ;;  %313 = vst [vmem:[#allocation8 + $0x48] sm:$0xff] %v416_v41  ;;  %v174_v42 = vpop.f32.mrb[1].mxu0  ;;  %v214_v43 = vpop.f32.mrb[1].mxu1 }
 0x11e   :  { %304 = vst [vmem:[#allocation8] sm:$0xff] %v174_v42  ;;  %312 = vst [vmem:[#allocation8 + $0x40] sm:$0xff] %v214_v43 }
 0x120   :  { %v407_v44 = vpop.f32.mrb[2].mxu0  ;;  %v419_v45 = vpop.f32.mrb[2].mxu1 }
 0x121   :  { %307 = vst [vmem:[#allocation8 + $0x18] sm:$0xff] %v407_v44  ;;  %315 = vst [vmem:[#allocation8 + $0x58] sm:$0xff] %v419_v45  ;;  %v184_v46 = vpop.f32.mrb[3].mxu0  ;;  %v224_v47 = vpop.f32.mrb[3].mxu1 }
 0x122   :  { %306 = vst [vmem:[#allocation8 + $0x10] sm:$0xff] %v184_v46  ;;  %314 = vst [vmem:[#allocation8 + $0x50] sm:$0xff] %v224_v47 }
 0x124   :  { %v410_v48 = vpop.f32.mrb[4].mxu0  ;;  %v422_v49 = vpop.f32.mrb[4].mxu1 }
 0x125   :  { %309 = vst [vmem:[#allocation8 + $0x28] sm:$0xff] %v410_v48  ;;  %317 = vst [vmem:[#allocation8 + $0x68] sm:$0xff] %v422_v49  ;;  %v194_v50 = vpop.f32.mrb[5].mxu0  ;;  %v234_v51 = vpop.f32.mrb[5].mxu1 }
 0x126   :  { %308 = vst [vmem:[#allocation8 + $0x20] sm:$0xff] %v194_v50  ;;  %316 = vst [vmem:[#allocation8 + $0x60] sm:$0xff] %v234_v51 }
 0x128   :  { %v413_v52 = vpop.f32.mrb[6].mxu0  ;;  %v425_v53 = vpop.f32.mrb[6].mxu1 }
 0x129   :  { %311 = vst [vmem:[#allocation8 + $0x38] sm:$0xff] %v413_v52  ;;  %319 = vst [vmem:[#allocation8 + $0x78] sm:$0xff] %v425_v53  ;;  %v204_v54 = vpop.f32.mrb[7].mxu0  ;;  %v244_v55 = vpop.f32.mrb[7].mxu1 }
 0x12a   :  { %310 = vst [vmem:[#allocation8 + $0x30] sm:$0xff] %v204_v54  ;;  %318 = vst [vmem:[#allocation8 + $0x70] sm:$0xff] %v244_v55 }
 0x12b   :  { %534 = shalt.err (!%p531_p6)
}
 0x12c   :  { %s535_s10 = scalar_lea.hbm %s618_s2, 2048 }
 0x12d   :  { %p536_p7 = scmp.ne.s32.totalorder %s618_s2, %s535_s10  ;;  %p539_p8 = scmp.lt.u32.totalorder %s535_s10, %s618_s2 }
 0x12f   :  { %p541_p9 = pnand %p539_p8, %p536_p7 }
 0x131   :  { %544 = shalt.err (!%p541_p9)
}
 0x132   :  { %331 = dma.vmem_to_hbm [thread:$0]  %s326_s6, 2048, %s618_s2, [#allocation5], %s552_s19, %s552_s19, %s553_s20  }
 0x133   :  { %549 = dma.done.wait [#allocation5], 2048  }
 0x134   :  { %550 = vsyncadd [#allocation5], 4294965248 }
 0x135   :  { %335 = vsyncpa [#allocation4], 1 }
 0x136   :  { %336 = vsyncpa [#allocation7], 1 }
 0x137   :  { %337 = vsyncpa [#allocation5], 1 }

</bundles_post_ra>
